<compile_context>
chip_gen: v7x
topology: tpu7x:2x2x1
jax: 0.10.0
libtpu: 0.0.40
codegen_flags: <defaults>
</compile_context>

<pallas_src>
import jax
import jax.numpy as jnp
from jax import lax
from jax.experimental import pallas as pl
from jax.experimental.pallas import tpu as pltpu


def _pos_embed_kernel(params_ref, o_ref):
    # params_ref: (3, 128*P) f32, rows = [lane->row offset, w per lane, b per lane]
    # o_ref:      (tq, 128*P)     lane-dense slab == row-major view of (tq*128, P)
    tq, lanes = o_ref.shape
    params = params_ref[...]
    lane_row = params[0:1, :]          # (1, lanes): l // P   (0..127)
    w_lane   = params[1:2, :]          # (1, lanes): w[l % P]
    b_lane   = params[2:3, :]          # (1, lanes): b[l % P]

    # Global slab-row index -> base batch row (exact in int32), then f32.
    q0 = pl.program_id(0) * tq
    base = (q0 + lax.broadcasted_iota(jnp.int32, (tq, lanes), 0)) * 128
    row = base.astype(jnp.float32) + lane_row          # batch row index per element

    # Conv1d(1->P, k=1) on the row index + tanh == per-channel affine + tanh (EUP).
    o_ref[...] = jnp.tanh(row * w_lane + b_lane).astype(o_ref.dtype)


def pos_embed(x, conv_weight, conv_bias, *, data_dim=3, pos_embed_dim=5,
              block_q=512, min_kernel_rows=2048):
    """x: (B, data_dim); conv_weight: (P, 1, 1); conv_bias: (P,). Returns (B, data_dim+P)."""
    B = x.shape[0]
    P = pos_embed_dim
    w = conv_weight.reshape(P).astype(jnp.float32)
    b = conv_bias.reshape(P).astype(jnp.float32)

    if B < min_kernel_rows:
        # Small-batch fast path: launch + per-step overhead dominates; XLA fuses this.
        idx = jnp.arange(B, dtype=jnp.float32)[:, None]
        pos = jnp.tanh(idx * w[None, :] + b[None, :])
        return jnp.concatenate([x, pos.astype(x.dtype)], axis=1)

    lanes = 128 * P
    Bp = pl.cdiv(B, 128) * 128            # pad batch to whole 128-row groups
    nq = Bp // 128                        # slab rows

    # Tile: <= block_q slab rows, multiple of 8, and >= 2 grid steps when
    # possible (keeps both v7x TensorCores busy under "parallel" semantics).
    if nq >= 16:
        tq = min(block_q, (nq + 1) // 2)
        tq = max(8, (tq // 8) * 8)
    else:
        tq = nq                           # single full-extent block
    grid = (pl.cdiv(nq, tq),)

    # Lane-constant parameters, pre-expanded once wrapper-side:
    # slab lane l corresponds to (row offset l // P, channel l % P).
    lane = jnp.arange(lanes)
    params = jnp.stack([
        (lane // P).astype(jnp.float32),  # row offset within a 128-row group
        jnp.tile(w, 128),                 # per-lane channel weight
        jnp.tile(b, 128),                 # per-lane channel bias
    ], axis=0)                            # (3, 128*P)

    slab = pl.pallas_call(
        _pos_embed_kernel,
        out_shape=jax.ShapeDtypeStruct((nq, lanes), x.dtype),
        grid=grid,
        in_specs=[
            # Constant index_map: the tiny params block stays resident in VMEM.
            pl.BlockSpec((3, lanes), lambda i: (0, 0)),
        ],
        out_specs=pl.BlockSpec((tq, lanes), lambda i: (i, 0)),
        compiler_params=pltpu.CompilerParams(
            dimension_semantics=("parallel",)),
    )(params)

    # Free row-major view (Bp, P) -> drop padded rows -> dense XLA concat with x.
    pos = slab.reshape(Bp, P)[:B]
    return jnp.concatenate([x, pos], axis=1)


def _reference(x, conv_weight, conv_bias):
    # Plain-JAX reference of the PyTorch forward.
    B = x.shape[0]
    P = conv_bias.shape[0]
    idx = jnp.arange(B, dtype=jnp.float32)[:, None]
    pos = jnp.tanh(idx * conv_weight.reshape(1, P) + conv_bias.reshape(1, P))
    return jnp.concatenate([x, pos.astype(x.dtype)], axis=1)


if __name__ == "__main__":
    data_dim, pos_embed_dim = 3, 5

    key = jax.random.PRNGKey(0)
    kx1, kx2, kw, kb = jax.random.split(key, 4)

    # nn.Conv1d(1, P, 1) default init bound = sqrt(1/(1*1)) = 1 -> uniform(-1, 1).
    conv_weight = jax.random.uniform(kw, (pos_embed_dim, 1, 1),
                                     minval=-1.0, maxval=1.0, dtype=jnp.float32)
    conv_bias = jax.random.uniform(kb, (pos_embed_dim,),
                                   minval=-1.0, maxval=1.0, dtype=jnp.float32)

    # 1) Kernel path: B not a multiple of 128 -> exercises row padding, a
    #    partial last grid block and a multi-step grid (Bp=2304, nq=18, grid=3).
    B1 = 2200
    x1 = jax.random.normal(kx1, (B1, data_dim), dtype=jnp.float32)
    out1 = jax.block_until_ready(
        pos_embed(x1, conv_weight, conv_bias,
                  data_dim=data_dim, pos_embed_dim=pos_embed_dim))
    ref1 = _reference(x1, conv_weight, conv_bias)
    assert out1.shape == (B1, data_dim + pos_embed_dim)
    assert jnp.allclose(out1, ref1, atol=1e-5, rtol=1e-5)

    # 2) Small-batch fast path (plain jnp; kernel launch overhead would dominate).
    B2 = 8
    x2 = jax.random.normal(kx2, (B2, data_dim), dtype=jnp.float32)
    out2 = jax.block_until_ready(
        pos_embed(x2, conv_weight, conv_bias,
                  data_dim=data_dim, pos_embed_dim=pos_embed_dim))
    ref2 = _reference(x2, conv_weight, conv_bias)
    assert out2.shape == (B2, data_dim + pos_embed_dim)
    assert jnp.allclose(out2, ref2, atol=1e-5, rtol=1e-5)

    print("KERNEL_OK")
</pallas_src>

<mosaic_0001>
module attributes {stable_mosaic.version = 11 : i64} {
  func.func @_pos_embed_kernel(%arg0: i32, %arg1: memref<3x640xf32, #tpu.memory_space<vmem>>, %arg2: memref<8x640xf32, #tpu.memory_space<vmem>>) attributes {dimension_semantics = [#tpu.dimension_semantics<parallel>], iteration_bounds = array<i64: 3>, scalar_prefetch = 0 : i64, scratch_operands = 0 : i64, tpu.core_type = #tpu.core_type<tc>, window_params = [{pipeline_mode = #tpu.pipeline_mode<synchronous>, transform_indices = @transform_0, window_bounds = array<i64: 3, 640>}, {transform_indices = @transform_1, window_bounds = array<i64: 8, 640>}]} {
    %c0 = arith.constant 0 : index
    %c0_0 = arith.constant 0 : index
    %0 = vector.load %arg1[%c0, %c0_0] : memref<3x640xf32, #tpu.memory_space<vmem>>, vector<3x640xf32>
    %1 = vector.extract_strided_slice %0 {offsets = [0, 0], sizes = [1, 640], strides = [1, 1]} : vector<3x640xf32> to vector<1x640xf32>
    %2 = vector.extract_strided_slice %0 {offsets = [1, 0], sizes = [1, 640], strides = [1, 1]} : vector<3x640xf32> to vector<1x640xf32>
    %3 = vector.extract_strided_slice %0 {offsets = [2, 0], sizes = [1, 640], strides = [1, 1]} : vector<3x640xf32> to vector<1x640xf32>
    %c8_i32 = arith.constant 8 : i32
    %4 = arith.muli %arg0, %c8_i32 : i32
    %5 = tpu.iota {dimensions = array<i32: 0>} : vector<8x640xi32>
    %6 = vector.broadcast %4 : i32 to vector<8x640xi32>
    %7 = arith.addi %6, %5 : vector<8x640xi32>
    %c128_i32 = arith.constant 128 : i32
    %8 = vector.broadcast %c128_i32 : i32 to vector<8x640xi32>
    %9 = arith.muli %7, %8 : vector<8x640xi32>
    %10 = arith.sitofp %9 : vector<8x640xi32> to vector<8x640xf32>
    %11 = vector.broadcast %1 : vector<1x640xf32> to vector<8x640xf32>
    %12 = arith.addf %10, %11 : vector<8x640xf32>
    %13 = vector.broadcast %2 : vector<1x640xf32> to vector<8x640xf32>
    %14 = arith.mulf %12, %13 : vector<8x640xf32>
    %15 = vector.broadcast %3 : vector<1x640xf32> to vector<8x640xf32>
    %16 = arith.addf %14, %15 : vector<8x640xf32>
    %17 = math.tanh %16 : vector<8x640xf32>
    %c0_1 = arith.constant 0 : index
    %c0_2 = arith.constant 0 : index
    %18 = vector.load %arg2[%c0_1, %c0_2] : memref<8x640xf32, #tpu.memory_space<vmem>>, vector<8x640xf32>
    tpu.vector_store %arg2[%c0_1, %c0_2], %17 {strides = array<i32>} : memref<8x640xf32, #tpu.memory_space<vmem>>, vector<8x640xf32>,
    return
  }
  func.func @transform_0(%arg0: i32) -> (i32, i32) {
    %c0_i32 = arith.constant 0 : i32
    %c0_i32_0 = arith.constant 0 : i32
    %c0_i32_1 = arith.constant 0 : i32
    return %c0_i32, %c0_i32_0 : i32, i32
  }
  func.func @transform_1(%arg0: i32) -> (i32, i32) {
    %c0_i32 = arith.constant 0 : i32
    %c0_i32_0 = arith.constant 0 : i32
    return %arg0, %c0_i32 : i32, i32
  }
}

</mosaic_0001>

<bundles_post_ra>
// kernel: tpu_custom_call.1
= control target key start
LH: loop header
LB: loop body
LE: loop exit
PB: predicated region body
PF: predicated region fallthrough
CT: control target
= control target key end

     0   :  { %6 = vsyncpa [#allocation3], 0  ;;  %s665_s0 = inlined_call_operand.hbm [shape: f32[3,640], index: 0, kind: input, shape index: {}]   ;;  %s666_s1 = inlined_call_operand.hbm [shape: f32[18,640], index: 1, kind: output, shape index: {}]  }
   0x1   :  { %7 = vsyncpa [#allocation4], 0 }
   0x2   :  { %9 = vsyncpa [#allocation4 + $0x1], 0  ;;  %s534_s6 = smov 0   ;;  %s536_s7 = smov 0  }
   0x3   :  { %s538_s8 = smov 0   ;;  %s540_s9 = smov 0  }
   0x4 LB: > { %s555_s10 = sadd.s32 4294967295, %s520_s9   ;;  %s355_s11 = sadd.s32 4294967294, %s520_s9   ;;  %s520_s9 = sphi %s540_s9, %s682_s9   ;;  %s516_s8 = sphi %s538_s8, %s681_s8   ;;  %s512_s7 = sphi %s536_s7, %s680_s7   ;;  %s508_s6 = sphi %s534_s6, %s679_s6  }
   0x5   : > { %s559_s12 = sadd.s32 1, %s520_s9   ;;  %s43_s13 = sadd.s32 1, %s516_s8 }
   0x6   : > { %s40_s14 = ssub.s32 %s520_s9, %s559_s12  ;;  %p53_p0 = scmp.ne.s32.totalorder %s516_s8, %s512_s7 }
   0x7   : > { %p41_p1 = scmp.eq.s32.totalorder %s40_s14, 0  ;;  %p54_p2 = scmp.eq.s32.totalorder %s555_s10, 2 }
   0x8   : > { %p59_p3 = scmp.ne.s32.totalorder %s512_s7, %s508_s6  ;;  %p60_p4 = scmp.eq.s32.totalorder %s355_s11, 2 }
   0x9   : > { %s570_s15 = scalar_select %p41_p1, %s516_s8, %s43_s13  }
   0xa   : > { %p572_p5 = por %p54_p2, %p53_p0  ;;  %p576_p6 = por %p60_p4, %p59_p3 }
   0xb   : > { %p356_p7 = scmp.ge.s32.totalorder %s520_s9, 1  ;;  %p67_p8 = scmp.lt.s32.totalorder %s520_s9, 4 }
   0xc   : > { %s670_s16 = scalar_select %p572_p5, 1, 0 }
   0xd   : > { %s671_s17 = scalar_select %p576_p6, 1, 0 }
   0xe   : > { %p667_p9 = scmp.eq.s32.totalorder %s555_s10, 0  ;;  %p583_p10 = pnand %p356_p7, %p67_p8 }
   0xf   : > { %s522_s19 = smov [#allocation2]   ;;  %s426_s24 = scalar_lea.hbm %s665_s0, 320 }
  0x10   : > { %s672_s18 = scalar_select %p583_p10, 1, 0 }
  0x11   : > { %s80_s20 = sshll.u32 %s522_s19, 4  ;;  %p372_p11 = pneg %p583_p10  ;;  %s81_s20 = int_to_ptr.vmem [resolvable:$true] %s80_s20 }
  0x12   : > { %p427_p13 = scmp.ne.s32.totalorder %s665_s0, %s426_s24  ;;  %p433_p3 = scmp.lt.u32.totalorder %s426_s24, %s665_s0 }
  0x13   : > { %p591_p12 = pnand %p667_p9, %p372_p11 }
  0x15   : > { %p428_p0 = pneg %p591_p12 }
  0x17   : > { %p429_p1 = pnand %p428_p0, %p427_p13 }
  0x19   : > { %p430_p2 = pneg %p429_p1 }
  0x1b   : > { %p435_p4 = pnand %p433_p3, %p430_p2 }
  0x1d   : > { %438 = shalt.err (!%p435_p4)
}
  0x1e   : > { %s439_s29 = scalar_lea.vmem %s81_s20, 320  ;;  %p447_p9 = scmp.lt.s32.totalorder %s81_s20, %s81_s20 }
  0x1f   : > { %p440_p7 = scmp.ne.s32.totalorder %s81_s20, %s439_s29  ;;  %p448_p6 = scmp.lt.s32.totalorder %s439_s29, %s439_s29 }
  0x21   : > { %p442_p8 = pnand %p440_p7, %p428_p0  ;;  %p449_p5 = por %p448_p6, %p447_p9 }
  0x23   : > { %p443_p11 = pneg %p442_p8 }
  0x25   : > { %p450_p10 = pnand %p449_p5, %p443_p11 }
  0x27   : > { %453 = shalt.err (!%p450_p10)
}
  0x28   : > { %375 = dma.hbm_to_vmem [thread:$0]  (!%p591_p12), %s665_s0, 320, %s81_s20, [#allocation3]  }
  0x29   : > { %p674_p13 = scmp.ne.s32.totalorder %s672_s18, 0 }
  0x2a   : > { %p675_p1 = scmp.eq.s32.totalorder (!%p674_p13), %s555_s10, 0 }
  0x2b   : > { %93 = sbr.rel (%p674_p13) target bundleno = 99 (0x63), region = 24 }
  0x32   : > { %499 = dma.done.wait (%p675_p1), [#allocation3], 320   ;;  %p676_p0 = pmov %p675_p1 }
  0x33   : > { %s360_s3 = sshll.u32 %s555_s10, 3  ;;  %v112_v0 = vlaneseq  ;;  %v108_v11 = vld [vmem:[#allocation2] sm:$0x77]  ;;  %v109_v12 = vld [vmem:[#allocation2 + $0x8] sm:$0x77]  ;;  %s105_s4 = sand.u32 1, %s512_s7  }
  0x34   : > { %501 = vsyncadd (%p676_p0), [#allocation3], 4294966976  ;;  %v114_v1 = vstv %s360_s3  ;;  %v110_v29 = vld [vmem:[#allocation2 + $0x10] sm:$0x7]  ;;  %s364_s5 = smul.u32 40, %s105_s4  ;;  %s282_s21 = scalar_lea.sflag [#allocation4], %s105_s4 }
  0x35   : > { %v113_v2 = vshrl.u32 %v112_v0, 7  ;;  %s365_s13 = smul.u32 640, %s555_s10  ;;  %p677_p6 = scmp.ne.s32.totalorder %s670_s16, 0 }
  0x36   : > { %s107_s11 = scalar_lea.vmem [#allocation5], %s364_s5  ;;  %s523_s22 = smov [#allocation5]  }
  0x37   : > { %v115_v3 = vadd.s32 %v114_v1, %v113_v2  ;;  %v123_v4 = vsub.s32 0, %v113_v2  ;;  %v173_v5 = vsub.s32 1, %v113_v2  ;;  %v223_v6 = vsub.s32 2, %v113_v2  ;;  %s296_s14 = sshll.u32 %s107_s11, 4  ;;  %s625_s20 = scalar_lea.hbm %s666_s1, %s365_s13  ;;  %s620_s14 = int_to_ptr.vmem [resolvable:$true] %s296_s14 }
  0x38   : > { %v127_v7 = vsub.s32 4, %v113_v2  ;;  %v177_v8 = vsub.s32 5, %v113_v2  ;;  %v227_v9 = vsub.s32 6, %v113_v2  ;;  %s454_s10 = scalar_lea.vmem %s620_s14, 640  ;;  %s458_s23 = sshll.u32 %s523_s22, 4  ;;  %s459_s23 = int_to_ptr.vmem [resolvable:$false] %s458_s23 }
  0x39   : > { %v116_v10 = vmul.u32 128, %v115_v3  ;;  %v124_v14 = vrot.slane %v108_v11, %v123_v4  ;;  %v174_v15 = vrot.slane %v108_v11, %v173_v5  ;;  %v224_v16 = vrot.slane %v108_v11, %v223_v6  ;;  %p455_p5 = scmp.ne.s32.totalorder %s620_s14, %s454_s10  ;;  %s460_s24 = scalar_lea.vmem %s459_s23, 1280 }
  0x3a   : > { %v128_v17 = vrot.slane %v108_v11, %v127_v7  ;;  %v178_v18 = vrot.slane %v108_v11, %v177_v8  ;;  %v228_v19 = vrot.slane %v108_v11, %v227_v9  ;;  %v132_v20 = vrot.slane %v109_v12, %v123_v4  ;;  %p461_p12 = scmp.lt.s32.totalorder %s620_s14, %s459_s23  ;;  %p462_p2 = scmp.lt.s32.totalorder %s460_s24, %s454_s10 }
  0x3b   : > { %v117_v13 = vcvt.s32.f32 %v116_v10  ;;  %v149_v21 = vrot.slane %v124_v14, %v123_v4  ;;  %v199_v22 = vrot.slane %v174_v15, %v173_v5  ;;  %v249_v23 = vrot.slane %v224_v16, %v223_v6  ;;  %p456_p9 = pnand %p455_p5, %p677_p6 }
  0x3c   : > { %v182_v24 = vrot.slane %v109_v12, %v173_v5  ;;  %v153_v25 = vrot.slane %v128_v17, %v123_v4  ;;  %v203_v26 = vrot.slane %v178_v18, %v173_v5  ;;  %v253_v27 = vrot.slane %v228_v19, %v223_v6  ;;  %p463_p3 = por %p462_p2, %p461_p12 }
  0x3d   : > { %v157_v28 = vrot.slane %v132_v20, %v123_v4  ;;  %v166_v30 = vadd.f32 %v149_v21, %v117_v13  ;;  %v232_v32 = vrot.slane %v109_v12, %v223_v6  ;;  %v136_v33 = vrot.slane %v109_v12, %v127_v7  ;;  %p457_p10 = pneg %p456_p9 }
  0x3e   : > { %v207_v31 = vrot.slane %v182_v24, %v173_v5  ;;  %v167_v34 = vadd.f32 %v153_v25, %v117_v13  ;;  %v186_v36 = vrot.slane %v109_v12, %v177_v8  ;;  %v236_v37 = vrot.slane %v109_v12, %v227_v9 }
  0x3f   : > { %v168_v35 = vadd.f32 %v157_v28, %v117_v13  ;;  %v216_v38 = vmul.f32 %v199_v22, %v166_v30  ;;  %v257_v39 = vrot.slane %v232_v32, %v223_v6  ;;  %v161_v40 = vrot.slane %v136_v33, %v123_v4  ;;  %p464_p4 = pnand %p463_p3, %p457_p10 }
  0x40   : > { %v140_v41 = vrot.slane %v110_v29, %v123_v4  ;;  %v217_v42 = vmul.f32 %v203_v26, %v167_v34  ;;  %v211_v44 = vrot.slane %v186_v36, %v173_v5  ;;  %v261_v45 = vrot.slane %v236_v37, %v223_v6 }
  0x41   : > { %v218_v43 = vmul.f32 %v207_v31, %v168_v35  ;;  %v266_v46 = vadd.f32 %v249_v23, %v216_v38  ;;  %v169_v47 = vadd.f32 %v161_v40, %v117_v13  ;;  %v190_v49 = vrot.slane %v110_v29, %v173_v5 }
  0x42   : > { %v165_v48 = vrot.slane %v140_v41, %v123_v4  ;;  %v267_v50 = vadd.f32 %v253_v27, %v217_v42  ;;  %v240_v52 = vrot.slane %v110_v29, %v223_v6 }
  0x43   : > { %v268_v51 = vadd.f32 %v257_v39, %v218_v43  ;;  %416 = vtanh.f32 %v266_v46  ;;  %v219_v53 = vmul.f32 %v211_v44, %v169_v47  ;;  %v215_v55 = vrot.slane %v190_v49, %v173_v5 }
  0x44   : > { %v170_v54 = vadd.f32 %v165_v48, %v117_v13  ;;  %418 = vtanh.f32 %v267_v50  ;;  %v265_v56 = vrot.slane %v240_v52, %v223_v6 }
  0x45   : > { %420 = vtanh.f32 %v268_v51  ;;  %v269_v57 = vadd.f32 %v261_v45, %v219_v53 }
  0x46   : > { %v220_v58 = vmul.f32 %v215_v55, %v170_v54 }
  0x47   : > { %422 = vtanh.f32 %v269_v57 }
  0x48   : > { %v270_v59 = vadd.f32 %v265_v56, %v220_v58 }
  0x4a   : > { %424 = vtanh.f32 %v270_v59 }
  0x4d   : > { %v417_v60 = vpop.eup %416 }
  0x4e   : > { %v419_v61 = vpop.eup %418  ;;  %276 = vst [vmem:[%s107_s11] sm:$0xff] %v417_v60 }
  0x4f   : > { %v421_v62 = vpop.eup %420  ;;  %277 = vst [vmem:[%s107_s11 + $0x8] sm:$0xff] %v419_v61 }
  0x50   : > { %278 = vst [vmem:[%s107_s11 + $0x10] sm:$0xff] %v421_v62 }
  0x51   : > { %v423_v63 = vpop.eup %422 }
  0x52   : > { %279 = vst [vmem:[%s107_s11 + $0x18] sm:$0xff] %v423_v63 }
  0x54   : > { %v425_v0 = vpop.eup %424 }
  0x55   : > { %280 = vst [vmem:[%s107_s11 + $0x20] sm:$0xff] %v425_v0 }
  0x56   : > { %467 = shalt.err (!%p464_p4)
}
  0x57   : > { %s468_s25 = scalar_lea.hbm %s625_s20, 640  ;;  %s472_s28 = scalar_lea.hbm %s666_s1, 1920 }
  0x58   : > { %p469_p7 = scmp.ne.s32.totalorder %s625_s20, %s468_s25  ;;  %p473_p13 = scmp.lt.u32.totalorder %s625_s20, %s666_s1 }
  0x59   : > { %p474_p1 = scmp.lt.u32.totalorder %s472_s28, %s468_s25  ;;  %p476_p5 = scmp.lt.u32.totalorder %s468_s25, %s625_s20 }
  0x5a   : > { %p470_p8 = pnand %p469_p7, %p677_p6 }
  0x5b   : > { %p475_p0 = por %p474_p1, %p473_p13 }
  0x5c   : > { %p471_p11 = pneg %p470_p8 }
  0x5d   : > { %p477_p9 = por %p476_p5, %p475_p0 }
  0x5f   : > { %p478_p10 = pnand %p477_p9, %p471_p11 }
  0x61   : > { %481 = shalt.err (!%p478_p10)
}
  0x62   : > { %370 = dma.vmem_to_hbm [thread:$0]  (%p677_p6), %s620_s14, 640, %s625_s20, %s282_s21  }
  0x63 PF: > { %p382_p12 = scmp.ge.s32.totalorder %s520_s9, 2  ;;  %s308_s2 = sand.u32 1, %s508_s6  }
  0x64   : > { %p678_p2 = scmp.ne.s32.totalorder %s671_s17, 0  ;;  %s309_s3 = scalar_lea.sflag [#allocation4], %s308_s2 }
  0x66   : > { %p377_p3 = pnand %p382_p12, %p678_p2 }
  0x68   : > { %503 = dma.done.wait (!%p377_p3), %s309_s3, 640  }
  0x69   : > { %505 = vsyncadd (!%p377_p3), %s309_s3, 4294966656  ;;  %p12_p4 = scmp.ge.s32.totalorder %s559_s12, 5   ;;  %s679_s6 = smov %s512_s7 }
  0x6a   : > { %s680_s7 = smov %s516_s8  ;;  %s681_s8 = smov %s570_s15 }
  0x6b   : > { %s682_s9 = smov %s559_s12  ;;  %14 = sbr.rel (!%p12_p4) target bundleno = 4 (0x4), region = 61 }
  0x72   :  { %314 = vsyncpa [#allocation3], 1 }
  0x73   :  { %316 = vsyncpa [#allocation3 + $0x1], 1 }
  0x74   :  { %317 = vsyncpa [#allocation4], 1 }
  0x75   :  { %319 = vsyncpa [#allocation4 + $0x1], 1 }

</bundles_post_ra>
